<compile_context>
chip_gen: v6e
topology: v6e:2x2x1
jax: 0.10.0
libtpu: 0.0.40
codegen_flags: <defaults>
</compile_context>

<pallas_src>
import random

import jax
import jax.numpy as jnp
import numpy as np
from jax.experimental import pallas as pl
from jax.experimental.pallas import tpu as pltpu

# ---------------- problem sizes (small, consistent with the module) -----------
B = 8            # batch
D = 16           # cfg.DATASET.INPUTE_SIZE[0]
F = 2 * D        # backbone feature dim (head input dim)
C = 10           # cfg.MODEL.NUM_CLASS
H = 3            # num_heads
HC = H * C       # head-major fused logit width
CH = C + H       # fused constant RHS width: [M_mean | S_seg]


def _align8(n):
    return ((n + 7) // 8) * 8


# sublane-aligned row offsets inside the packed parameter slab (all starts % 8 == 0)
_R_WB = 0                        # (D, F)   backbone weight            rows [0, 16)
_R_BB = _align8(_R_WB + D)       # (1, F)   backbone bias              row  16
_R_WH = _align8(_R_BB + 1)       # (F, HC)  fused head weights         rows [24, 56)
_R_BH = _align8(_R_WH + F)       # (1, HC)  fused head biases          row  56
_R_CW = _align8(_R_BH + 1)       # (1, HC)  per-head CE class weights  row  64
_R_CONST = _align8(_R_CW + 1)    # (HC, CH) [M_mean | S_seg] constants rows [72, 102)
_ROWS = _align8(_R_CONST + HC)   # 104 total rows
_LANES = max(F, HC, CH)          # 32 lanes


# ---------------- Pallas kernel ------------------------------------------------
def mhml_kernel(x_ref, lbl_ref, wp_ref, mean_ref, loss_ref):
    x = x_ref[...]                                        # (B, D)
    lbl = lbl_ref[...]                                    # (B, 1) int32

    # ---- unpack the single packed slab with aligned static slices ------------
    wb = wp_ref[_R_WB:_R_WB + D, 0:F]                     # (D, F)
    bb = wp_ref[_R_BB:_R_BB + 1, 0:F]                     # (1, F)
    wh = wp_ref[_R_WH:_R_WH + F, 0:HC]                    # (F, HC)
    bh = wp_ref[_R_BH:_R_BH + 1, 0:HC]                    # (1, HC)
    cw = wp_ref[_R_CW:_R_CW + 1, 0:HC]                    # (1, HC)
    rhs = wp_ref[_R_CONST:_R_CONST + HC, 0:CH]            # (HC, CH) = [M_mean | S_seg]

    # ---- backbone: Linear(D -> F) + ReLU (MXU + VPU) --------------------------
    feat = jnp.maximum(jnp.dot(x, wb, preferred_element_type=jnp.float32) + bb, 0.0)

    # ---- all H heads in a single fused matmul (head-major columns) ------------
    logits = jnp.dot(feat, wh, preferred_element_type=jnp.float32) + bh   # (B, HC)

    # ---- in-kernel tiled one-hot from int32 labels (VPU compares) --------------
    lane = jax.lax.broadcasted_iota(jnp.int32, (B, HC), 1)
    oh_rep = jnp.zeros((B, HC), jnp.float32)
    for h in range(H):
        oh_rep = oh_rep + (lane == (lbl + h * C)).astype(jnp.float32)

    # ---- per-head softmax stabilizer (masked maxes, broadcast per column) -----
    m_bcast = jnp.zeros((B, HC), jnp.float32)
    for h in range(H):
        in_head = (lane >= h * C) & (lane < (h + 1) * C)
        mh = jnp.max(jnp.where(in_head, logits, jnp.float32(-1e30)),
                     axis=-1, keepdims=True)              # (B, 1)
        m_bcast = m_bcast + jnp.where(in_head, mh, 0.0)

    z = logits - m_bcast                                  # per-head stabilized
    e = jnp.exp(z)                                        # single EUP pass

    # ---- ONE fused MXU matmul for the four post-logit reductions ---------------
    #   rows [0B,1B) = e          -> seg_sum      (per-head softmax denominators)
    #   rows [1B,2B) = onehot*z   -> z at label   (per head)
    #   rows [2B,3B) = onehot*cw  -> per-sample class weight (per head)
    #   rows [3B,4B) = logits     -> mean-over-heads logits (via M_mean columns)
    lhs = jnp.concatenate([e, oh_rep * z, oh_rep * cw, logits], axis=0)   # (4B, HC)
    fused = jnp.dot(lhs, rhs, preferred_element_type=jnp.float32)          # (4B, CH)

    seg_sum = fused[0 * B:1 * B, C:CH]                    # (B, H)
    z_lbl = fused[1 * B:2 * B, C:CH]                      # (B, H)
    psw = fused[2 * B:3 * B, C:CH]                        # (B, H)
    mean_logits = fused[3 * B:4 * B, 0:C]                 # (B, C)

    # ---- weighted per-head CE (== torch cross_entropy with weight, 'mean') -----
    nll = jnp.log(seg_sum) - z_lbl                        # (B, H)
    num = jnp.sum(nll * psw, axis=0, keepdims=True)       # (1, H)
    den = jnp.sum(psw, axis=0, keepdims=True)             # (1, H)
    loss_class = jnp.sum(num / den)                       # scalar: sum over heads

    mean_ref[...] = mean_logits                           # (B, C) output

    # ---- unweighted CE on mean-over-heads logits --------------------------------
    onehot = oh_rep[:, 0:C]                               # head-0 block == plain one-hot
    m2 = jnp.max(mean_logits, axis=-1, keepdims=True)
    z2 = mean_logits - m2
    lse2 = jnp.log(jnp.sum(jnp.exp(z2), axis=-1, keepdims=True))           # (B, 1)
    nll2 = lse2 - jnp.sum(onehot * z2, axis=-1, keepdims=True)             # (B, 1)
    overall = jnp.sum(nll2) * (1.0 / B)

    # ---- combined loss -> SMEM scalar output -------------------------------------
    loss_ref[0] = (loss_class + overall) * (1.0 / (H + 1))


# ---------------- one-time parameter packing (init path, not per-call) ----------
def _make_const_rhs():
    """(HC, C+H): cols [0,C) = M_mean (eye/H per head block); cols [C,C+H) = S_seg."""
    rhs = np.zeros((HC, CH), np.float32)
    for h in range(H):
        rhs[h * C:(h + 1) * C, 0:C] = np.eye(C, dtype=np.float32) / H
        rhs[h * C:(h + 1) * C, C + h] = 1.0
    return rhs


def pack_params(params, ce_weights):
    """Pack all weights + constants once into a single sublane-aligned slab."""
    slab = np.zeros((_ROWS, _LANES), np.float32)
    slab[_R_WB:_R_WB + D, 0:F] = np.asarray(params["wb"])
    slab[_R_BB, 0:F] = np.asarray(params["bb"]).reshape(F)
    wh_fused = np.transpose(np.asarray(params["wh"]), (1, 0, 2)).reshape(F, HC)
    slab[_R_WH:_R_WH + F, 0:HC] = wh_fused
    slab[_R_BH, 0:HC] = np.asarray(params["bh"]).reshape(HC)
    slab[_R_CW, 0:HC] = np.asarray(ce_weights).reshape(HC)
    slab[_R_CONST:_R_CONST + HC, 0:CH] = _make_const_rhs()
    return jnp.asarray(slab)


# ---------------- forward wrapper -----------------------------------------------
@jax.jit
def mhml_forward(x, labels, w_packed):
    """Training-mode forward: returns (mean-over-heads logits, combined loss)."""
    lbl = labels.astype(jnp.int32).reshape(B, 1)
    mean_logits, loss = pl.pallas_call(
        mhml_kernel,
        out_shape=(
            jax.ShapeDtypeStruct((B, C), jnp.float32),
            jax.ShapeDtypeStruct((1,), jnp.float32),
        ),
        in_specs=[
            pl.BlockSpec(memory_space=pltpu.MemorySpace.VMEM),
            pl.BlockSpec(memory_space=pltpu.MemorySpace.VMEM),
            pl.BlockSpec(memory_space=pltpu.MemorySpace.VMEM),
        ],
        out_specs=(
            pl.BlockSpec(memory_space=pltpu.MemorySpace.VMEM),
            pl.BlockSpec(memory_space=pltpu.MemorySpace.SMEM),
        ),
    )(x, lbl, w_packed)
    return mean_logits, loss[0]


# ---------------- deterministic parameter / weight construction ------------------
def make_params(key):
    kb, kbb, kh, khb = jax.random.split(key, 4)
    return {
        "wb": jax.random.normal(kb, (D, F), jnp.float32) * (1.0 / np.sqrt(D)),
        "bb": jax.random.normal(kbb, (1, F), jnp.float32) * 0.01,
        "wh": jax.random.normal(kh, (H, F, C), jnp.float32) * (1.0 / np.sqrt(F)),
        "bh": jax.random.normal(khb, (H, C), jnp.float32) * 0.01,
    }


def make_ce_weights():
    # Reproduce __init__: shuffle classes, split across heads; weight = H for a head's
    # assigned classes else 1/H (the second assignment in the torch source wins).
    random.seed(0)
    classes = list(range(C))
    random.shuffle(classes)
    groups = np.array_split(np.asarray(classes), H)
    ws = []
    for grp in groups:
        ws.append([float(H) if i in grp else 1.0 / H for i in range(C)])
    return jnp.asarray(ws, dtype=jnp.float32)             # (H, C)


# ---------------- pure-JAX reference (sanity check) ------------------------------
def reference_forward(x, labels, params, ce_weights):
    feat = jnp.maximum(x @ params["wb"] + params["bb"], 0.0)
    heads = [feat @ params["wh"][i] + params["bh"][i] for i in range(H)]
    out = jnp.stack(heads, axis=-2)                       # (B, H, C)
    onehot = jax.nn.one_hot(labels, C, dtype=jnp.float32)

    def ce(logits, weight=None):
        logp = jax.nn.log_softmax(logits, axis=-1)
        nll = -jnp.sum(onehot * logp, axis=-1)
        if weight is None:
            return jnp.mean(nll)
        pw = jnp.sum(onehot * weight[None, :], axis=-1)
        return jnp.sum(nll * pw) / jnp.sum(pw)

    loss_class = jnp.float32(0.0)
    for i in range(H):
        loss_class = loss_class + ce(out[:, i, :], ce_weights[i])
    overall = ce(out.mean(axis=1))
    loss = (loss_class + overall) / (H + 1)
    return jnp.mean(out, axis=-2), loss


# ---------------- main ------------------------------------------------------------
if __name__ == "__main__":
    key = jax.random.PRNGKey(0)
    kx, kl, kp = jax.random.split(key, 3)

    x = jax.random.normal(kx, (B, D), jnp.float32)
    labels = jax.random.randint(kl, (B,), 0, C, jnp.int32)
    params = make_params(kp)
    ce_weights = make_ce_weights()

    w_packed = pack_params(params, ce_weights)   # packed ONCE at init, not per call

    mean_logits, loss = mhml_forward(x, labels, w_packed)
    jax.block_until_ready((mean_logits, loss))

    ref_logits, ref_loss = reference_forward(x, labels, params, ce_weights)
    # Tolerance accommodates TPU default matmul precision (bf16-pass) differences
    # between the fused in-kernel matmuls and the XLA reference ops.
    np.testing.assert_allclose(np.asarray(mean_logits), np.asarray(ref_logits),
                               rtol=2e-2, atol=2e-2)
    np.testing.assert_allclose(np.asarray(loss), np.asarray(ref_loss),
                               rtol=2e-2, atol=2e-2)

    print("KERNEL_OK")
</pallas_src>

<mosaic_0001>
module attributes {stable_mosaic.version = 11 : i64} {
  func.func @mhml_kernel(%arg0: memref<8x16xf32, #tpu.memory_space<vmem>>, %arg1: memref<8x1xi32, #tpu.memory_space<vmem>>, %arg2: memref<104x32xf32, #tpu.memory_space<vmem>>, %arg3: memref<8x10xf32, #tpu.memory_space<vmem>>, %arg4: memref<1xf32, #tpu.memory_space<smem>>) attributes {dimension_semantics = [], scalar_prefetch = 0 : i64, scratch_operands = 0 : i64, tpu.core_type = #tpu.core_type<tc>} {
    %c0 = arith.constant 0 : index
    %c0_0 = arith.constant 0 : index
    %0 = vector.load %arg0[%c0, %c0_0] : memref<8x16xf32, #tpu.memory_space<vmem>>, vector<8x16xf32>
    %c0_1 = arith.constant 0 : index
    %c0_2 = arith.constant 0 : index
    %1 = vector.load %arg1[%c0_1, %c0_2] : memref<8x1xi32, #tpu.memory_space<vmem>>, vector<8x1xi32>
    %c0_3 = arith.constant 0 : index
    %c0_4 = arith.constant 0 : index
    %2 = vector.load %arg2[%c0_3, %c0_4] : memref<104x32xf32, #tpu.memory_space<vmem>>, vector<16x32xf32>
    %c16 = arith.constant 16 : index
    %c0_5 = arith.constant 0 : index
    %3 = vector.load %arg2[%c16, %c0_5] : memref<104x32xf32, #tpu.memory_space<vmem>>, vector<1x32xf32>
    %c24 = arith.constant 24 : index
    %c0_6 = arith.constant 0 : index
    %4 = vector.load %arg2[%c24, %c0_6] : memref<104x32xf32, #tpu.memory_space<vmem>>, vector<32x30xf32>
    %c56 = arith.constant 56 : index
    %c0_7 = arith.constant 0 : index
    %5 = vector.load %arg2[%c56, %c0_7] : memref<104x32xf32, #tpu.memory_space<vmem>>, vector<1x30xf32>
    %c64 = arith.constant 64 : index
    %c0_8 = arith.constant 0 : index
    %6 = vector.load %arg2[%c64, %c0_8] : memref<104x32xf32, #tpu.memory_space<vmem>>, vector<1x30xf32>
    %c72 = arith.constant 72 : index
    %c0_9 = arith.constant 0 : index
    %7 = vector.load %arg2[%c72, %c0_9] : memref<104x32xf32, #tpu.memory_space<vmem>>, vector<30x13xf32>
    %cst = arith.constant dense<0.000000e+00> : vector<8x32xf32>
    %8 = tpu.matmul %0, %2, %cst {dimension_numbers = #tpu.dot_dimension_numbers<[1], [0], [0], [1], [0, 0, 1, 1], [], []>} : vector<8x16xf32>, vector<16x32xf32>, vector<8x32xf32> -> vector<8x32xf32>
    %9 = vector.broadcast %3 : vector<1x32xf32> to vector<8x32xf32>
    %10 = arith.addf %8, %9 : vector<8x32xf32>
    %cst_10 = arith.constant 0.000000e+00 : f32
    %11 = vector.broadcast %cst_10 : f32 to vector<8x32xf32>
    %12 = arith.maximumf %10, %11 : vector<8x32xf32>
    %cst_11 = arith.constant dense<0.000000e+00> : vector<8x30xf32>
    %13 = tpu.matmul %12, %4, %cst_11 {dimension_numbers = #tpu.dot_dimension_numbers<[1], [0], [0], [1], [0, 0, 1, 1], [], []>} : vector<8x32xf32>, vector<32x30xf32>, vector<8x30xf32> -> vector<8x30xf32>
    %14 = vector.broadcast %5 : vector<1x30xf32> to vector<8x30xf32>
    %15 = arith.addf %13, %14 : vector<8x30xf32>
    %16 = tpu.iota {dimensions = array<i32: 1>} : vector<8x30xi32>
    %cst_12 = arith.constant 0.000000e+00 : f32
    %17 = vector.broadcast %cst_12 : f32 to vector<8x30xf32>
    %c0_i32 = arith.constant 0 : i32
    %18 = vector.broadcast %c0_i32 : i32 to vector<8x1xi32>
    %19 = arith.addi %1, %18 : vector<8x1xi32>
    %20 = vector.broadcast %19 : vector<8x1xi32> to vector<8x30xi32>
    %21 = arith.cmpi eq, %16, %20 : vector<8x30xi32>
    %22 = arith.extui %21 : vector<8x30xi1> to vector<8x30xi32>
    %23 = arith.sitofp %22 : vector<8x30xi32> to vector<8x30xf32>
    %24 = arith.addf %17, %23 : vector<8x30xf32>
    %c10_i32 = arith.constant 10 : i32
    %25 = vector.broadcast %c10_i32 : i32 to vector<8x1xi32>
    %26 = arith.addi %1, %25 : vector<8x1xi32>
    %27 = vector.broadcast %26 : vector<8x1xi32> to vector<8x30xi32>
    %28 = arith.cmpi eq, %16, %27 : vector<8x30xi32>
    %29 = arith.extui %28 : vector<8x30xi1> to vector<8x30xi32>
    %30 = arith.sitofp %29 : vector<8x30xi32> to vector<8x30xf32>
    %31 = arith.addf %24, %30 : vector<8x30xf32>
    %c20_i32 = arith.constant 20 : i32
    %32 = vector.broadcast %c20_i32 : i32 to vector<8x1xi32>
    %33 = arith.addi %1, %32 : vector<8x1xi32>
    %34 = vector.broadcast %33 : vector<8x1xi32> to vector<8x30xi32>
    %35 = arith.cmpi eq, %16, %34 : vector<8x30xi32>
    %36 = arith.extui %35 : vector<8x30xi1> to vector<8x30xi32>
    %37 = arith.sitofp %36 : vector<8x30xi32> to vector<8x30xf32>
    %38 = arith.addf %31, %37 : vector<8x30xf32>
    %cst_13 = arith.constant 0.000000e+00 : f32
    %39 = vector.broadcast %cst_13 : f32 to vector<8x30xf32>
    %c0_i32_14 = arith.constant 0 : i32
    %40 = vector.broadcast %c0_i32_14 : i32 to vector<8x30xi32>
    %41 = arith.cmpi sge, %16, %40 : vector<8x30xi32>
    %c10_i32_15 = arith.constant 10 : i32
    %42 = vector.broadcast %c10_i32_15 : i32 to vector<8x30xi32>
    %43 = arith.cmpi slt, %16, %42 : vector<8x30xi32>
    %44 = arith.andi %41, %43 : vector<8x30xi1>
    %cst_16 = arith.constant -1.000000e+30 : f32
    %45 = vector.broadcast %cst_16 : f32 to vector<8x30xf32>
    %46 = arith.select %44, %15, %45 : vector<8x30xi1>, vector<8x30xf32>
    %cst_17 = arith.constant dense<0xFF800000> : vector<8xf32>
    %47 = vector.multi_reduction <maximumf>, %46, %cst_17 [1] : vector<8x30xf32> to vector<8xf32>
    %48 = vector.shape_cast %47 : vector<8xf32> to vector<8x1xf32>
    %cst_18 = arith.constant 0.000000e+00 : f32
    %49 = vector.shape_cast %48 : vector<8x1xf32> to vector<8x1xf32>
    %50 = vector.broadcast %49 : vector<8x1xf32> to vector<8x30xf32>
    %51 = vector.broadcast %cst_18 : f32 to vector<8x30xf32>
    %52 = arith.select %44, %50, %51 : vector<8x30xi1>, vector<8x30xf32>
    %53 = arith.addf %39, %52 : vector<8x30xf32>
    %c10_i32_19 = arith.constant 10 : i32
    %54 = vector.broadcast %c10_i32_19 : i32 to vector<8x30xi32>
    %55 = arith.cmpi sge, %16, %54 : vector<8x30xi32>
    %c20_i32_20 = arith.constant 20 : i32
    %56 = vector.broadcast %c20_i32_20 : i32 to vector<8x30xi32>
    %57 = arith.cmpi slt, %16, %56 : vector<8x30xi32>
    %58 = arith.andi %55, %57 : vector<8x30xi1>
    %cst_21 = arith.constant -1.000000e+30 : f32
    %59 = vector.broadcast %cst_21 : f32 to vector<8x30xf32>
    %60 = arith.select %58, %15, %59 : vector<8x30xi1>, vector<8x30xf32>
    %cst_22 = arith.constant dense<0xFF800000> : vector<8xf32>
    %61 = vector.multi_reduction <maximumf>, %60, %cst_22 [1] : vector<8x30xf32> to vector<8xf32>
    %62 = vector.shape_cast %61 : vector<8xf32> to vector<8x1xf32>
    %cst_23 = arith.constant 0.000000e+00 : f32
    %63 = vector.shape_cast %62 : vector<8x1xf32> to vector<8x1xf32>
    %64 = vector.broadcast %63 : vector<8x1xf32> to vector<8x30xf32>
    %65 = vector.broadcast %cst_23 : f32 to vector<8x30xf32>
    %66 = arith.select %58, %64, %65 : vector<8x30xi1>, vector<8x30xf32>
    %67 = arith.addf %53, %66 : vector<8x30xf32>
    %c20_i32_24 = arith.constant 20 : i32
    %68 = vector.broadcast %c20_i32_24 : i32 to vector<8x30xi32>
    %69 = arith.cmpi sge, %16, %68 : vector<8x30xi32>
    %c30_i32 = arith.constant 30 : i32
    %70 = vector.broadcast %c30_i32 : i32 to vector<8x30xi32>
    %71 = arith.cmpi slt, %16, %70 : vector<8x30xi32>
    %72 = arith.andi %69, %71 : vector<8x30xi1>
    %cst_25 = arith.constant -1.000000e+30 : f32
    %73 = vector.broadcast %cst_25 : f32 to vector<8x30xf32>
    %74 = arith.select %72, %15, %73 : vector<8x30xi1>, vector<8x30xf32>
    %cst_26 = arith.constant dense<0xFF800000> : vector<8xf32>
    %75 = vector.multi_reduction <maximumf>, %74, %cst_26 [1] : vector<8x30xf32> to vector<8xf32>
    %76 = vector.shape_cast %75 : vector<8xf32> to vector<8x1xf32>
    %cst_27 = arith.constant 0.000000e+00 : f32
    %77 = vector.shape_cast %76 : vector<8x1xf32> to vector<8x1xf32>
    %78 = vector.broadcast %77 : vector<8x1xf32> to vector<8x30xf32>
    %79 = vector.broadcast %cst_27 : f32 to vector<8x30xf32>
    %80 = arith.select %72, %78, %79 : vector<8x30xi1>, vector<8x30xf32>
    %81 = arith.addf %67, %80 : vector<8x30xf32>
    %82 = arith.subf %15, %81 : vector<8x30xf32>
    %83 = math.exp %82 : vector<8x30xf32>
    %84 = arith.mulf %38, %82 : vector<8x30xf32>
    %85 = vector.broadcast %6 : vector<1x30xf32> to vector<8x30xf32>
    %86 = arith.mulf %38, %85 : vector<8x30xf32>
    %87 = tpu.concatenate %83, %84, %86, %15 in 0 : vector<8x30xf32>, vector<8x30xf32>, vector<8x30xf32>, vector<8x30xf32> -> vector<32x30xf32>
    %cst_28 = arith.constant dense<0.000000e+00> : vector<32x13xf32>
    %88 = tpu.matmul %87, %7, %cst_28 {dimension_numbers = #tpu.dot_dimension_numbers<[1], [0], [0], [1], [0, 0, 1, 1], [], []>} : vector<32x30xf32>, vector<30x13xf32>, vector<32x13xf32> -> vector<32x13xf32>
    %89 = vector.extract_strided_slice %88 {offsets = [0, 10], sizes = [8, 3], strides = [1, 1]} : vector<32x13xf32> to vector<8x3xf32>
    %90 = vector.extract_strided_slice %88 {offsets = [8, 10], sizes = [8, 3], strides = [1, 1]} : vector<32x13xf32> to vector<8x3xf32>
    %91 = vector.extract_strided_slice %88 {offsets = [16, 10], sizes = [8, 3], strides = [1, 1]} : vector<32x13xf32> to vector<8x3xf32>
    %92 = vector.extract_strided_slice %88 {offsets = [24, 0], sizes = [8, 10], strides = [1, 1]} : vector<32x13xf32> to vector<8x10xf32>
    %93 = math.log %89 : vector<8x3xf32>
    %94 = arith.subf %93, %90 : vector<8x3xf32>
    %95 = arith.mulf %94, %91 : vector<8x3xf32>
    %cst_29 = arith.constant dense<0.000000e+00> : vector<3xf32>
    %96 = vector.multi_reduction <add>, %95, %cst_29 [0] : vector<8x3xf32> to vector<3xf32>
    %97 = vector.shape_cast %96 : vector<3xf32> to vector<1x3xf32>
    %cst_30 = arith.constant dense<0.000000e+00> : vector<3xf32>
    %98 = vector.multi_reduction <add>, %91, %cst_30 [0] : vector<8x3xf32> to vector<3xf32>
    %99 = vector.shape_cast %98 : vector<3xf32> to vector<1x3xf32>
    %100 = arith.divf %97, %99 : vector<1x3xf32>
    %101 = vector.shape_cast %100 : vector<1x3xf32> to vector<1x1x3xf32>
    %cst_31 = arith.constant dense<0.000000e+00> : vector<1xf32>
    %102 = vector.multi_reduction <add>, %101, %cst_31 [1, 2] : vector<1x1x3xf32> to vector<1xf32>
    %103 = vector.shape_cast %102 : vector<1xf32> to vector<1x1x1xf32>
    %104 = vector.extract %103[0, 0, 0] : f32 from vector<1x1x1xf32>
    %c0_32 = arith.constant 0 : index
    %c0_33 = arith.constant 0 : index
    %105 = vector.load %arg3[%c0_32, %c0_33] : memref<8x10xf32, #tpu.memory_space<vmem>>, vector<8x10xf32>
    tpu.vector_store %arg3[%c0_32, %c0_33], %92 {strides = array<i32>} : memref<8x10xf32, #tpu.memory_space<vmem>>, vector<8x10xf32>,
    %106 = vector.extract_strided_slice %38 {offsets = [0, 0], sizes = [8, 10], strides = [1, 1]} : vector<8x30xf32> to vector<8x10xf32>
    %cst_34 = arith.constant dense<0xFF800000> : vector<8xf32>
    %107 = vector.multi_reduction <maximumf>, %92, %cst_34 [1] : vector<8x10xf32> to vector<8xf32>
    %108 = vector.shape_cast %107 : vector<8xf32> to vector<8x1xf32>
    %109 = vector.broadcast %108 : vector<8x1xf32> to vector<8x10xf32>
    %110 = arith.subf %92, %109 : vector<8x10xf32>
    %111 = math.exp %110 : vector<8x10xf32>
    %cst_35 = arith.constant dense<0.000000e+00> : vector<8xf32>
    %112 = vector.multi_reduction <add>, %111, %cst_35 [1] : vector<8x10xf32> to vector<8xf32>
    %113 = vector.shape_cast %112 : vector<8xf32> to vector<8x1xf32>
    %114 = math.log %113 : vector<8x1xf32>
    %115 = arith.mulf %106, %110 : vector<8x10xf32>
    %cst_36 = arith.constant dense<0.000000e+00> : vector<8xf32>
    %116 = vector.multi_reduction <add>, %115, %cst_36 [1] : vector<8x10xf32> to vector<8xf32>
    %117 = vector.shape_cast %116 : vector<8xf32> to vector<8x1xf32>
    %118 = arith.subf %114, %117 : vector<8x1xf32>
    %119 = vector.shape_cast %118 : vector<8x1xf32> to vector<1x8x1xf32>
    %cst_37 = arith.constant dense<0.000000e+00> : vector<1xf32>
    %120 = vector.multi_reduction <add>, %119, %cst_37 [1, 2] : vector<1x8x1xf32> to vector<1xf32>
    %121 = vector.shape_cast %120 : vector<1xf32> to vector<1x1x1xf32>
    %122 = vector.extract %121[0, 0, 0] : f32 from vector<1x1x1xf32>
    %cst_38 = arith.constant 1.250000e-01 : f32
    %123 = arith.mulf %122, %cst_38 : f32
    %124 = arith.addf %104, %123 : f32
    %cst_39 = arith.constant 2.500000e-01 : f32
    %125 = arith.mulf %124, %cst_39 : f32
    %c0_40 = arith.constant 0 : index
    %126 = memref.load %arg4[%c0_40] : memref<1xf32, #tpu.memory_space<smem>>
    memref.store %125, %arg4[%c0_40] : memref<1xf32, #tpu.memory_space<smem>>
    return
  }
}

</mosaic_0001>

<bundles_post_ra>
// kernel: mhml_forward.1
= control target key start
LH: loop header
LB: loop body
LE: loop exit
PB: predicated region body
PF: predicated region fallthrough
CT: control target
= control target key end

     0   :  { %10 = vsyncpa [#allocation3], 0  ;;  %v565_v1 = vmov 0.0   ;;  %vm566_vm0 = vmmov 0   ;;  %s687_s0 = inlined_call_operand.vmem [shape: f32[8,16], index: 0, kind: input, shape index: {}]   ;;  %s688_s1 = inlined_call_operand.vmem [shape: s32[8,1], index: 1, kind: input, shape index: {}]   ;;  %s689_s2 = inlined_call_operand.vmem [shape: f32[104,32], index: 2, kind: input, shape index: {}]   ;;  %s690_s3 = inlined_call_operand.hbm [shape: f32[8,10], index: 3, kind: output, shape index: {0}]   ;;  %s691_s4 = inlined_call_operand.hbm [shape: f32[1], index: 4, kind: output, shape index: {1}]  }
   0x1   :  { %v21_v0 = vld [vmem:[%s689_s2 + $0x8] sm:$0xff]  ;;  %479 = vmatprep.subr.mxu1 %v565_v1  ;;  %v20_v2 = vld [vmem:[%s689_s2] sm:$0xff]  ;;  %483 = vmatprep.mubr.msk.f32.mxu1 %vm566_vm0, %v565_v1 }
   0x2   :  { %11 = vsyncpa [#allocation4], 0  ;;  %480 = vmatpush3.msra.mxu1 %v21_v0  ;;  %v18_v3 = vld [vmem:[%s687_s0] sm:$0xff]  ;;  %vm37_vm1 = vcmask 130048   ;;  %v26_v4 = vld [vmem:[%s689_s2 + $0x30] sm:$0xff]  ;;  %v567_v9 = vmov 0   ;;  %v190_v15 = vlaneseq }
   0x3   :  { %481 = vmatprep.subr.mxu1 %v565_v1  ;;  %v25_v5 = vld [vmem:[%s689_s2 + $0x28] sm:$0xff]  ;;  %v24_v6 = vld [vmem:[%s689_s2 + $0x20] sm:$0xff]  ;;  %v23_v7 = vld [vmem:[%s689_s2 + $0x18] sm:$0xff]  ;;  %521 = vset.pattern.permute.xlu1 %v567_v9  ;;  %vm116_vm2 = vcmask 261120   ;;  %vm219_vm9 = vcmask 244736   ;;  %vm264_vm11 = vcmask 1045504  }
   0x4   :  { %482 = vmatpush3.msra.mxu1 %v20_v2  ;;  %v19_v8 = vld [vmem:[%s688_s1] sm:$0xff]  ;;  %522 = vset.pattern.permute.xlu0 %v567_v9  ;;  %v450_v10 = vld [vmem:[%s689_s2 + $0x10] ss:$0 sm:$0xff]  ;;  %v191_v16 = vand.u32 127, %v190_v15  ;;  %v452_v17 = vld [vmem:[%s689_s2 + $0x38] ss:$0 sm:$0xff] }
   0x5   :  { %484 = vmatmul.mubr.msk.f32.vlgmr.msra.gmra.mxu1 %vm37_vm1, %v18_v3  ;;  %486 = vmatprep.subr.mxu1 %v565_v1  ;;  %v207_v29 = vadd.s32 20, %v19_v8  ;;  %v199_v30 = vadd.s32 10, %v19_v8  ;;  %v32_v31 = vld [vmem:[%s689_s2 + $0x60] sm:$0x3f]  ;;  %v31_v32 = vld [vmem:[%s689_s2 + $0x58] sm:$0xff]  ;;  %v30_v33 = vld [vmem:[%s689_s2 + $0x50] sm:$0xff] }
   0x6   :  { %487 = vmatpush3.msra.mxu1 %v26_v4  ;;  %494 = vmatprep.mubr.msk.f32.mxu1 %vm566_vm0, %v565_v1  ;;  %vm234_vm3 = vcmp.ge.s32.totalorder %v191_v16, 20  ;;  %vm235_vm4 = vcmp.lt.s32.totalorder %v191_v16, 30  ;;  %vm225_vm5 = vcmp.ge.s32.totalorder %v191_v16, 10  ;;  %vm226_vm6 = vcmp.lt.s32.totalorder %v191_v16, 20  ;;  %v29_v34 = vld [vmem:[%s689_s2 + $0x48] sm:$0xff]  ;;  %s569_s17 = smov [#allocation2]  }
   0x7   :  { %488 = vmatprep.subr.mxu1 %v565_v1  ;;  %193 = vperm.xlu1 %521, %v19_v8   ;;  %vm634_vm7 = vmand %vm234_vm3, %vm235_vm4  ;;  %vm216_vm8 = vcmp.lt.s32.totalorder %v191_v16, 10  ;;  %v457_v53 = vld [vmem:[%s689_s2 + $0x40] ss:$0 sm:$0xff]  ;;  %vm389_vm15 = vcmask 80896   ;;  %vm357_vm0 = vcmask 105552   ;;  %s568_s2 = smov 118  }
   0x8   :  { %489 = vmatpush3.msra.mxu1 %v25_v5  ;;  %vm638_vm10 = vmand %vm225_vm5, %vm226_vm6  ;;  %497 = vmatprep.subr.msk.mxu0 %vm264_vm11, %v32_v31  ;;  %vm378_vm1 = vcmask 16384   ;;  %s429_s18 = sshll.u32 %s569_s17, 4  ;;  %s430_s18 = int_to_ptr.vmem [resolvable:$true] %s429_s18 }
   0x9   :  { %490 = vmatprep.subr.mxu1 %v565_v1  ;;  %498 = vmatpush3.msk.msra.mxu0 %vm264_vm11, %v32_v31  ;;  %s533_s19 = scalar_lea.vmem %s430_s18, 128  ;;  %p538_p1 = scmp.lt.s32.totalorder %s430_s18, %s430_s18 }
   0xa   :  { %491 = vmatpush3.msra.mxu1 %v24_v6  ;;  %499 = vmatprep.subr.mxu0 %v31_v32  ;;  %p534_p0 = scmp.ne.s32.totalorder %s430_s18, %s533_s19  ;;  %p539_p2 = scmp.lt.s32.totalorder %s533_s19, %s533_s19 }
   0xb   :  { %492 = vmatprep.subr.mxu1 %v565_v1  ;;  %500 = vmatpush3.msra.mxu0 %v31_v32 }
   0xc   :  { %493 = vmatpush3.msra.mxu1 %v23_v7  ;;  %501 = vmatprep.subr.mxu0 %v30_v33  ;;  %p540_p3 = por %p539_p2, %p538_p1 }
   0xd   :  { %502 = vmatpush3.msra.mxu0 %v30_v33 }
   0xe   :  { %503 = vmatprep.subr.mxu0 %v29_v34  ;;  %p541_p4 = pnand %p540_p3, %p534_p0 }
   0xf   :  { %504 = vmatpush3.msra.mxu0 %v29_v34 }
  0x82   :  { %v194_v35 = vpop.permute.xlu1 %193 }
  0x83   :  { %vm195_vm13 = vcmp.eq.s32.totalorder %v191_v16, %v194_v35 }
  0x84   :  { %v454_v49 = vsel %vm195_vm13, 1.0, %v565_v1 }
  0xc5   :  { %v107_v11 = vpop.f32.mrf.mxu1 }
  0xc6   :  { %v108_v12 = vadd.f32 %v450_v10, %v107_v11 }
  0xc7   :  { %v485_v13 = vpop.f32.mrf.mxu1 }
  0xc8   :  { %v111_v14 = vmax.f32 %v108_v12, 0.0 }
  0xca   :  { %495 = vmatmul.mubr.msk.f32.vlgmr.msra.gmra.mxu1 %vm116_vm2, %v111_v14  ;;  %vm407_vm2 = vcmask 7168  }
 0x18a   :  { %v186_v18 = vpop.f32.mrf.mxu1 }
 0x18b   :  { %v187_v20 = vadd.f32 %v452_v17, %v186_v18 }
 0x18c   :  { %v496_v21 = vpop.f32.mrf.mxu1 }
 0x18d   :  { %v237_v23 = vsel %vm634_vm7, %v187_v20, -1e+30  ;;  %v218_v24 = vsel %vm216_vm8, %v187_v20, -1e+30  ;;  %v228_v27 = vsel %vm638_vm10, %v187_v20, -1e+30 }
 0x18e   :  { %v238_v25 = vsel %vm219_vm9, %v237_v23, -inf  ;;  %v220_v26 = vsel %vm219_vm9, %v218_v24, -inf  ;;  %v229_v28 = vsel %vm219_vm9, %v228_v27, -inf }
 0x18f   :  { %239 = vmax.xlane.f32.xlu1 %v238_v25  ;;  %221 = vmax.xlane.f32.xlu0 %v220_v26 }
 0x193   :  { %230 = vmax.xlane.f32.xlu0 %v229_v28 }
 0x1a0   :  { %209 = vperm.xlu1 %521, %v207_v29  }
 0x1a9   :  { %201 = vperm.xlu0 %522, %v199_v30  }
 0x218   :  { %v222_v36 = vpop.xlane.xlu0 %221  ;;  %v240_v37 = vpop.xlane.xlu1 %239 }
 0x219   :  { %v223_v39 = vsel %vm216_vm8, %v222_v36, 0.0  ;;  %v241_v42 = vsel %vm634_vm7, %v240_v37, 0.0 }
 0x21c   :  { %v231_v38 = vpop.xlane.xlu0 %230  ;;  %v210_v47 = vpop.permute.xlu1 %209 }
 0x21d   :  { %v232_v40 = vsel %vm638_vm10, %v231_v38, 0.0  ;;  %vm211_vm14 = vcmp.eq.s32.totalorder %v191_v16, %v210_v47 }
 0x21e   :  { %v233_v41 = vadd.f32 %v232_v40, %v223_v39  ;;  %v456_v51 = vsel %vm211_vm14, 1.0, %v565_v1 }
 0x220   :  { %v242_v43 = vadd.f32 %v241_v42, %v233_v41 }
 0x222   :  { %v243_v44 = vsub.f32 %v187_v20, %v242_v43 }
 0x224   :  { %v244_v45 = vmul.f32 1.442695, %v243_v44  ;;  %v202_v46 = vpop.permute.xlu0 %201 }
 0x225   :  { %vm203_vm12 = vcmp.eq.s32.totalorder %v191_v16, %v202_v46 }
 0x226   :  { %523 = vpow2.f32 %v244_v45  ;;  %v455_v48 = vsel %vm203_vm12, 1.0, %v565_v1 }
 0x227   :  { %v206_v50 = vadd.f32 %v455_v48, %v454_v49 }
 0x229   :  { %v214_v52 = vadd.f32 %v456_v51, %v206_v50 }
 0x22b   :  { %v246_v55 = vmul.f32 %v243_v44, %v214_v52  ;;  %v251_v56 = vmul.f32 %v457_v53, %v214_v52 }
 0x233   :  { %v524_v54 = vpop.eup %523 }
 0x234   :  { %505 = vmatprep.mubr.msk.f32.mxu0 %vm219_vm9, %v524_v54 }
 0x235   :  { %506 = vmatmul.mubr.msk.f32.vlgmr.msra.gmra.mxu0 %vm219_vm9, %v246_v55 }
 0x236   :  { %508 = vmatprep.mubr.msk.f32.mxu0 %vm219_vm9, %v251_v56 }
 0x239   :  { %509 = vmatmul.mubr.msk.f32.gmra.mxu0 %vm219_vm9, %v187_v20 }
 0x2f5   :  { %v507_v57 = vpop.f32.mrf.mxu0 }
 0x2f7   :  { %v334_v58 = vpop.f32.mrf.mxu0 }
 0x2f8   :  { %525 = vlog2.f32 %v334_v58 }
 0x2f9   :  { %v510_v59 = vpop.f32.mrf.mxu0 }
 0x2fa   :  { %v391_v60 = vsel %vm389_vm15, %v510_v59, -inf  ;;  %390 = vst.msk [vmem:[#allocation2] sm:$0xff] %vm389_vm15, %v510_v59 }
 0x2fb   :  { %392 = vmax.xlane.f32.xlu1 %v391_v60  ;;  %v344_v0 = vpop.f32.mrf.mxu0 }
 0x2fc   :  { %v365_v1 = vsel %vm357_vm0, %v344_v0, 0.0 }
 0x2fd   :  { %v366_v2 = vrot.slane %v365_v1, 4 }
 0x2ff   :  { %v367_v3 = vadd.f32 %v366_v2, %v365_v1 }
 0x301   :  { %v368_v5 = vrot.slane %v367_v3, 2 }
 0x303   :  { %v369_v7 = vadd.f32 %v368_v5, %v367_v3 }
 0x305   :  { %v526_v61 = vpop.eup %525  ;;  %v370_v9 = vrot.slane %v369_v7, 1 }
 0x306   :  { %v354_v62 = vmul.f32 0.6931472, %v526_v61 }
 0x307   :  { %v371_v13 = vadd.f32 %v370_v9, %v369_v7 }
 0x308   :  { %v355_v63 = vsub.f32 %v354_v62, %v507_v57 }
 0x30a   :  { %v356_v4 = vmul.f32 %v355_v63, %v344_v0 }
 0x30c   :  { %v358_v6 = vsel %vm357_vm0, %v356_v4, 0.0 }
 0x30d   :  { %v359_v8 = vrot.slane %v358_v6, 4 }
 0x30f   :  { %v360_v11 = vadd.f32 %v359_v8, %v358_v6 }
 0x311   :  { %v361_v16 = vrot.slane %v360_v11, 2 }
 0x313   :  { %v362_v18 = vadd.f32 %v361_v16, %v360_v11 }
 0x315   :  { %v363_v19 = vrot.slane %v362_v18, 1 }
 0x317   :  { %v364_v20 = vadd.f32 %v363_v19, %v362_v18 }
 0x384   :  { %v393_v10 = vpop.xlane.xlu1 %392 }
 0x385   :  { %v394_v12 = vsub.f32 %v510_v59, %v393_v10 }
 0x387   :  { %v395_v14 = vmul.f32 1.442695, %v394_v12  ;;  %v402_v15 = vmul.f32 %v394_v12, %v214_v52 }
 0x389   :  { %527 = vpow2.f32 %v395_v14  ;;  %v403_v17 = vsel %vm389_vm15, %v402_v15, 0.0 }
 0x38a   :  { %404 = vadd.xlane.f32.xlu1 %v403_v17  ;;  %529 = vrcp.f32 %v371_v13 }
 0x396   :  { %v528_v21 = vpop.eup %527 }
 0x397   :  { %v397_v22 = vsel %vm389_vm15, %v528_v21, 0.0  ;;  %v530_v23 = vpop.eup %529 }
 0x398   :  { %398 = vadd.xlane.f32.xlu0 %v397_v22  ;;  %v373_v24 = vmul.f32 %v530_v23, %v364_v20 }
 0x39b   :  { %375 = vrot.lane.b32.xlu1 %v373_v24, %s568_s2 }
 0x413   :  { %v405_v25 = vpop.xlane.xlu1 %404 }
 0x417   :  { %v376_v26 = vpop.permute.xlu1 %375 }
 0x418   :  { %v379_v27 = vsel %vm378_vm1, %v376_v26, 0.0 }
 0x419   :  { %380 = vadd.xlane.f32.xlu1 %v379_v27 }
 0x421   :  { %v399_v28 = vpop.xlane.xlu0 %398 }
 0x422   :  { %531 = vlog2.f32 %v399_v28 }
 0x42f   :  { %v532_v29 = vpop.eup %531 }
 0x430   :  { %v401_v30 = vmul.f32 0.6931472, %v532_v29 }
 0x432   :  { %v406_v31 = vsub.f32 %v401_v30, %v405_v25 }
 0x434   :  { %v408_v32 = vsel %vm407_vm2, %v406_v31, 0.0 }
 0x435   :  { %409 = vadd.xlane.f32.xlu0 %v408_v32 }
 0x436   :  { %544 = shalt.err (!%p541_p4)
}
 0x437   :  { %432 = dma.vmem_to_hbm [thread:$0]  %s430_s18, 128, %s690_s3, [#allocation3]  }
 0x438   :  { %s570_s25 = smov [#allocation5]  }
 0x4a2   :  { %v381_v33 = vpop.xlane.xlu1 %380 }
 0x4a3   :  { %v382_v34 = vrot.slane %v381_v33, 4 }
 0x4a5   :  { %v383_v35 = vadd.f32 %v382_v34, %v381_v33 }
 0x4a7   :  { %v384_v36 = vrot.slane %v383_v35, 2 }
 0x4a9   :  { %v385_v37 = vadd.f32 %v384_v36, %v383_v35 }
 0x4ab   :  { %v386_v38 = vrot.slane %v385_v37, 1 }
 0x4ad   :  { %v387_v39 = vadd.f32 %v386_v38, %v385_v37 }
 0x4af   :  { %511 = vpush %v387_v39 }
 0x4be   :  { %v410_v40 = vpop.xlane.xlu0 %409 }
 0x4bf   :  { %v411_v41 = vrot.slane %v410_v40, 4 }
 0x4c1   :  { %v412_v42 = vadd.f32 %v411_v41, %v410_v40 }
 0x4c3   :  { %v413_v43 = vrot.slane %v412_v42, 2 }
 0x4c5   :  { %v414_v44 = vadd.f32 %v413_v43, %v412_v42 }
 0x4c7   :  { %v415_v45 = vrot.slane %v414_v44, 1 }
 0x4c9   :  { %v416_v46 = vadd.f32 %v415_v45, %v414_v44 }
 0x4cb   :  { %513 = vpush %v416_v46 }
 0x4e0   :  { %s512_s22 = spop %511 }
 0x4fc   :  { %s514_s23 = spop %513 }
 0x4fd   :  { %s418_s24 = smul.f32 0.125, %s514_s23 }
 0x4ff   :  { %s419_s3 = sadd.f32 %s512_s22, %s418_s24 }
 0x501   :  { %s420_s0 = smul.f32 0.25, %s419_s3 }
 0x503   :  { %422 = sst [smem:[#allocation5]] %s420_s0 }
 0x504   :  { %440 = dma.smem_to_hbm %s570_s25, 16, %s691_s4, [#allocation4]  }
 0x505   :  { %561 = dma.done.wait [#allocation3], 128  }
 0x506   :  { %562 = vsyncadd [#allocation3], 4294967168 }
 0x507   :  { %563 = dma.done.wait [#allocation4], 16  }
 0x508   :  { %564 = vsyncadd [#allocation4], 4294967280 }
 0x509   :  { %447 = sfence }
 0x50a   :  { %448 = vsyncpa [#allocation3], 1 }
 0x50b   :  { %449 = vsyncpa [#allocation4], 1 }

</bundles_post_ra>
